<compile_context>
chip_gen: v6e
topology: v6e:2x2x1
jax: 0.10.0
libtpu: 0.0.40
codegen_flags: <defaults>
</compile_context>

<pallas_src>
import jax
import jax.numpy as jnp
import numpy as np
from jax.experimental import pallas as pl
from jax.experimental.pallas import tpu as pltpu


_LANE_CANDIDATES = (1024, 512, 256, 128)
_MAX_BLOCK_BYTES = 2 * 1024 * 1024   # per-operand block; 3 ops x 2 bufs = 12 MiB
_FAST_PATH_BYTES = 4 * 1024 * 1024   # x + noise + out resident at once
_FAST_PATH_MAX_B = 16                # fast-path kernel unrolls over batch


def _factor_k(k):
    """Split the per-batch payload k into (rows S, lanes L) with no padding."""
    for lanes in _LANE_CANDIDATES:
        if k % lanes == 0:
            return k // lanes, lanes
    return 1, k  # ragged k: single row, full-extent lane block (always legal)


def _row_tile(s, lanes, itemsize):
    """Largest legal row block (multiple of 8 dividing s, or full s), <= ~2 MiB."""
    if s <= 8:
        return s
    max_rows = max(8, _MAX_BLOCK_BYTES // (lanes * itemsize))
    if s <= max_rows:
        return s
    t = (min(max_rows, s) // 8) * 8
    while t >= 8:
        if s % t == 0:
            return t
        t -= 8
    return s  # no multiple-of-8 divisor: full-extent rows (rare, e.g. prime S)


def _make_small_kernel(num_batches, inv_k_snr):
    """Whole-slab kernel: power + std + add in one body (small inputs)."""
    def kernel(x_ref, n_ref, o_ref):
        for b in range(num_batches):                      # static unroll
            xb = x_ref[b].astype(jnp.float32)             # (S, L)
            sq = jnp.sum(xb * xb, axis=1, keepdims=True)  # (S, 1)   lane reduce
            pwr = jnp.sum(sq, axis=0, keepdims=True)      # (1, 1)   sublane reduce
            std = jnp.sqrt(pwr * inv_k_snr)               # (1, 1)   EUP
            yb = xb + n_ref[b].astype(jnp.float32) * std  # broadcast (1,1)
            o_ref[b] = yb.astype(o_ref.dtype)
    return kernel


def _make_fused_kernel(inv_k_snr):
    """Two-phase fused kernel: phase 0 = power accumulate, phase 1 = add."""
    def kernel(x_ref, n_ref, o_ref, acc_ref):
        phase = pl.program_id(1)
        rblk = pl.program_id(2)

        @pl.when((phase == 0) & (rblk == 0))
        def _init():
            acc_ref[...] = jnp.zeros_like(acc_ref)

        @pl.when(phase == 0)
        def _accumulate():
            xv = x_ref[...].astype(jnp.float32)                  # (TR, L)
            sq = jnp.sum(xv * xv, axis=1, keepdims=True)         # (TR, 1)
            acc_ref[...] += jnp.sum(sq, axis=0, keepdims=True)   # (1, 1)

        @pl.when((phase == 1) & (rblk == 0))
        def _finalize_std():
            # std = sqrt(sum|x|^2 * 10^(-snr/10) / (2k)); sqrt rides the EUP.
            acc_ref[...] = jnp.sqrt(acc_ref[...] * inv_k_snr)

        @pl.when(phase == 1)
        def _emit():
            xv = x_ref[...].astype(jnp.float32)
            nv = n_ref[...].astype(jnp.float32)
            o_ref[...] = (xv + nv * acc_ref[...]).astype(o_ref.dtype)
    return kernel


def channel_awgn(z_hat, *, snr=20.0, key=None, _force_tiled=False):
    """JAX/Pallas equivalent of Channel(channel_type='AWGN', snr=snr).forward.

    Pass a fresh `key` per call for independent noise draws (torch draws fresh
    noise every forward).  The noise stream is jax.random.normal, so outputs
    are statistically (not bitwise) equivalent to the PyTorch module.
    """
    z = jnp.asarray(z_hat)
    if not jnp.issubdtype(z.dtype, jnp.floating):
        z = z.astype(jnp.float32)
    if z.ndim == 3 or z.ndim == 1:
        z = z[None]
    if key is None:
        key = jax.random.PRNGKey(0)

    orig_shape = z.shape
    batch = orig_shape[0]
    k = int(np.prod(orig_shape[1:]))

    s, lanes = _factor_k(k)
    x = z.reshape(batch, s, lanes)                  # metadata-only reshape, no pad
    noise = jax.random.normal(key, (batch, s, lanes), dtype=z.dtype)

    itemsize = jnp.dtype(z.dtype).itemsize
    inv_k_snr = float(10.0 ** (-float(snr) / 10.0) / (2.0 * k))
    total_bytes = batch * k * itemsize

    use_fast = (not _force_tiled and batch <= _FAST_PATH_MAX_B
                and 3 * total_bytes <= _FAST_PATH_BYTES)

    if use_fast:
        out = pl.pallas_call(
            _make_small_kernel(batch, inv_k_snr),
            out_shape=jax.ShapeDtypeStruct((batch, s, lanes), z.dtype),
            grid=(1,),
            in_specs=[
                pl.BlockSpec((batch, s, lanes), lambda i: (0, 0, 0)),
                pl.BlockSpec((batch, s, lanes), lambda i: (0, 0, 0)),
            ],
            out_specs=pl.BlockSpec((batch, s, lanes), lambda i: (0, 0, 0)),
            compiler_params=pltpu.CompilerParams(
                dimension_semantics=("arbitrary",)),
        )(x, noise)
    else:
        tr = _row_tile(s, lanes, itemsize)
        nb = s // tr
        out = pl.pallas_call(
            _make_fused_kernel(inv_k_snr),
            out_shape=jax.ShapeDtypeStruct((batch, s, lanes), z.dtype),
            grid=(batch, 2, nb),
            in_specs=[
                # x: streamed in both phases (power pass, then add pass).
                pl.BlockSpec((None, tr, lanes), lambda b, p, r: (b, r, 0)),
                # noise: only needed in phase 1; park on block 0 during phase 0
                # so it is not streamed twice.
                pl.BlockSpec((None, tr, lanes), lambda b, p, r: (b, r * p, 0)),
            ],
            out_specs=pl.BlockSpec((None, tr, lanes),
                                   lambda b, p, r: (b, r * p, 0)),
            scratch_shapes=[pltpu.VMEM((1, 1), jnp.float32)],
            compiler_params=pltpu.CompilerParams(
                dimension_semantics=("parallel", "arbitrary", "arbitrary")),
        )(x, noise)

    return out.reshape(orig_shape)


if __name__ == "__main__":
    snr = 20.0
    # NCHW input, small shapes: batch=2, channels=4, spatial=16x16.
    x = jax.random.normal(jax.random.PRNGKey(0), (2, 4, 16, 16),
                          dtype=jnp.float32)
    noise_key = jax.random.PRNGKey(1)

    # Pure-JAX reference of the PyTorch forward using the same noise draw
    # (same key / internal shape / dtype as channel_awgn uses).
    b = x.shape[0]
    k = int(np.prod(x.shape[1:]))
    s, lanes = _factor_k(k)
    noise_ref = jax.random.normal(noise_key, (b, s, lanes),
                                  dtype=jnp.float32).reshape(x.shape)
    sig_pwr = jnp.sum(x * x, axis=(1, 2, 3), keepdims=True) / k
    std_ref = jnp.sqrt(sig_pwr / (10.0 ** (snr / 10.0)) / 2.0)
    ref = x + noise_ref * std_ref

    # Small-input fast path (single-block kernel).
    y_fast = jax.block_until_ready(channel_awgn(x, snr=snr, key=noise_key))
    assert y_fast.shape == x.shape
    assert bool(jnp.allclose(y_fast, ref, atol=1e-4, rtol=1e-4)), \
        "fast-path output mismatch vs reference"

    # Fused two-phase tiled path, exercised on the same input for coverage.
    y_tiled = jax.block_until_ready(
        channel_awgn(x, snr=snr, key=noise_key, _force_tiled=True))
    assert y_tiled.shape == x.shape
    assert bool(jnp.allclose(y_tiled, ref, atol=1e-4, rtol=1e-4)), \
        "tiled-path output mismatch vs reference"

    # Noise-power sanity check (~ sig_pwr / 100 at 20 dB).
    noi = y_fast - x
    noi_pwr = jnp.sum(noi * noi, axis=(1, 2, 3)) / k
    expected = sig_pwr.squeeze() / (10.0 ** (snr / 10.0))
    assert bool(jnp.all(noi_pwr > 0.0)) and bool(jnp.all(noi_pwr < 5.0 * expected))

    print("KERNEL_OK")
</pallas_src>

<mosaic_0001>
module attributes {stable_mosaic.version = 11 : i64} {
  func.func @kernel(%arg0: i32, %arg1: memref<2x1x1024xf32, #tpu.memory_space<vmem>>, %arg2: memref<2x1x1024xf32, #tpu.memory_space<vmem>>, %arg3: memref<2x1x1024xf32, #tpu.memory_space<vmem>>) attributes {dimension_semantics = [#tpu.dimension_semantics<arbitrary>], iteration_bounds = array<i64: 1>, scalar_prefetch = 0 : i64, scratch_operands = 0 : i64, tpu.core_type = #tpu.core_type<tc>, window_params = [{pipeline_mode = #tpu.pipeline_mode<synchronous>, transform_indices = @transform_0, window_bounds = array<i64: 2, 1, 1024>}, {pipeline_mode = #tpu.pipeline_mode<synchronous>, transform_indices = @transform_1, window_bounds = array<i64: 2, 1, 1024>}, {pipeline_mode = #tpu.pipeline_mode<synchronous>, transform_indices = @transform_2, window_bounds = array<i64: 2, 1, 1024>}]} {
    %c0 = arith.constant 0 : index
    %c0_0 = arith.constant 0 : index
    %c0_1 = arith.constant 0 : index
    %0 = vector.load %arg1[%c0, %c0_0, %c0_1] : memref<2x1x1024xf32, #tpu.memory_space<vmem>>, vector<1x1x1024xf32>
    %1 = vector.shape_cast %0 : vector<1x1x1024xf32> to vector<1x1024xf32>
    %2 = arith.mulf %1, %1 : vector<1x1024xf32>
    %cst = arith.constant dense<0.000000e+00> : vector<1xf32>
    %3 = vector.multi_reduction <add>, %2, %cst [1] : vector<1x1024xf32> to vector<1xf32>
    %4 = vector.shape_cast %3 : vector<1xf32> to vector<1x1xf32>
    %cst_2 = arith.constant dense<0.000000e+00> : vector<1xf32>
    %5 = vector.multi_reduction <add>, %4, %cst_2 [0] : vector<1x1xf32> to vector<1xf32>
    %6 = vector.shape_cast %5 : vector<1xf32> to vector<1x1xf32>
    %cst_3 = arith.constant 4.88281239E-6 : f32
    %7 = vector.broadcast %cst_3 : f32 to vector<1x1xf32>
    %8 = arith.mulf %6, %7 : vector<1x1xf32>
    %9 = math.sqrt %8 : vector<1x1xf32>
    %c0_4 = arith.constant 0 : index
    %c0_5 = arith.constant 0 : index
    %c0_6 = arith.constant 0 : index
    %10 = vector.load %arg2[%c0_4, %c0_5, %c0_6] : memref<2x1x1024xf32, #tpu.memory_space<vmem>>, vector<1x1x1024xf32>
    %11 = vector.shape_cast %10 : vector<1x1x1024xf32> to vector<1x1024xf32>
    %12 = vector.broadcast %9 : vector<1x1xf32> to vector<1x1024xf32>
    %13 = arith.mulf %11, %12 : vector<1x1024xf32>
    %14 = arith.addf %1, %13 : vector<1x1024xf32>
    %c0_7 = arith.constant 0 : index
    %c0_8 = arith.constant 0 : index
    %c0_9 = arith.constant 0 : index
    %15 = vector.load %arg3[%c0_7, %c0_8, %c0_9] : memref<2x1x1024xf32, #tpu.memory_space<vmem>>, vector<1x1x1024xf32>
    %16 = vector.shape_cast %15 : vector<1x1x1024xf32> to vector<1x1024xf32>
    %17 = vector.shape_cast %14 : vector<1x1024xf32> to vector<1x1x1024xf32>
    tpu.vector_store %arg3[%c0_7, %c0_8, %c0_9], %17 {strides = array<i32>} : memref<2x1x1024xf32, #tpu.memory_space<vmem>>, vector<1x1x1024xf32>,
    %c1 = arith.constant 1 : index
    %c0_10 = arith.constant 0 : index
    %c0_11 = arith.constant 0 : index
    %18 = vector.load %arg1[%c1, %c0_10, %c0_11] : memref<2x1x1024xf32, #tpu.memory_space<vmem>>, vector<1x1x1024xf32>
    %19 = vector.shape_cast %18 : vector<1x1x1024xf32> to vector<1x1024xf32>
    %20 = arith.mulf %19, %19 : vector<1x1024xf32>
    %cst_12 = arith.constant dense<0.000000e+00> : vector<1xf32>
    %21 = vector.multi_reduction <add>, %20, %cst_12 [1] : vector<1x1024xf32> to vector<1xf32>
    %22 = vector.shape_cast %21 : vector<1xf32> to vector<1x1xf32>
    %cst_13 = arith.constant dense<0.000000e+00> : vector<1xf32>
    %23 = vector.multi_reduction <add>, %22, %cst_13 [0] : vector<1x1xf32> to vector<1xf32>
    %24 = vector.shape_cast %23 : vector<1xf32> to vector<1x1xf32>
    %cst_14 = arith.constant 4.88281239E-6 : f32
    %25 = vector.broadcast %cst_14 : f32 to vector<1x1xf32>
    %26 = arith.mulf %24, %25 : vector<1x1xf32>
    %27 = math.sqrt %26 : vector<1x1xf32>
    %c1_15 = arith.constant 1 : index
    %c0_16 = arith.constant 0 : index
    %c0_17 = arith.constant 0 : index
    %28 = vector.load %arg2[%c1_15, %c0_16, %c0_17] : memref<2x1x1024xf32, #tpu.memory_space<vmem>>, vector<1x1x1024xf32>
    %29 = vector.shape_cast %28 : vector<1x1x1024xf32> to vector<1x1024xf32>
    %30 = vector.broadcast %27 : vector<1x1xf32> to vector<1x1024xf32>
    %31 = arith.mulf %29, %30 : vector<1x1024xf32>
    %32 = arith.addf %19, %31 : vector<1x1024xf32>
    %c1_18 = arith.constant 1 : index
    %c0_19 = arith.constant 0 : index
    %c0_20 = arith.constant 0 : index
    %33 = vector.load %arg3[%c1_18, %c0_19, %c0_20] : memref<2x1x1024xf32, #tpu.memory_space<vmem>>, vector<1x1x1024xf32>
    %34 = vector.shape_cast %33 : vector<1x1x1024xf32> to vector<1x1024xf32>
    %35 = vector.shape_cast %32 : vector<1x1024xf32> to vector<1x1x1024xf32>
    tpu.vector_store %arg3[%c1_18, %c0_19, %c0_20], %35 {strides = array<i32>} : memref<2x1x1024xf32, #tpu.memory_space<vmem>>, vector<1x1x1024xf32>,
    return
  }
  func.func @transform_0(%arg0: i32) -> (i32, i32, i32) {
    %c0_i32 = arith.constant 0 : i32
    %c0_i32_0 = arith.constant 0 : i32
    %c0_i32_1 = arith.constant 0 : i32
    %c0_i32_2 = arith.constant 0 : i32
    return %c0_i32, %c0_i32_0, %c0_i32_1 : i32, i32, i32
  }
  func.func @transform_1(%arg0: i32) -> (i32, i32, i32) {
    %c0_i32 = arith.constant 0 : i32
    %c0_i32_0 = arith.constant 0 : i32
    %c0_i32_1 = arith.constant 0 : i32
    %c0_i32_2 = arith.constant 0 : i32
    return %c0_i32, %c0_i32_0, %c0_i32_1 : i32, i32, i32
  }
  func.func @transform_2(%arg0: i32) -> (i32, i32, i32) {
    %c0_i32 = arith.constant 0 : i32
    %c0_i32_0 = arith.constant 0 : i32
    %c0_i32_1 = arith.constant 0 : i32
    %c0_i32_2 = arith.constant 0 : i32
    return %c0_i32, %c0_i32_0, %c0_i32_1 : i32, i32, i32
  }
}

</mosaic_0001>

<bundles_post_ra>
// kernel: tpu_custom_call.1
= control target key start
LH: loop header
LB: loop body
LE: loop exit
PB: predicated region body
PF: predicated region fallthrough
CT: control target
= control target key end

     0   :  { %7 = vsyncpa [#allocation3], 0  ;;  %s365_s0 = inlined_call_operand.hbm [shape: f32[2,1,1024], index: 0, kind: input, shape index: {}]   ;;  %s366_s1 = inlined_call_operand.hbm [shape: f32[2,1,1024], index: 1, kind: input, shape index: {}]   ;;  %s367_s2 = inlined_call_operand.hbm [shape: f32[2,1,1024], index: 2, kind: output, shape index: {}]  }
   0x1   :  { %8 = vsyncpa [#allocation6], 0 }
   0x2   :  { %9 = vsyncpa [#allocation4], 0  ;;  %s295_s9 = smov [#allocation2]  }
   0x3   :  { %s15_s10 = sshll.u32 %s295_s9, 4  ;;  %s16_s10 = int_to_ptr.vmem [resolvable:$true] %s15_s10 }
   0x4   :  { %s237_s11 = scalar_lea.vmem %s16_s10, 256  ;;  %p242_p1 = scmp.lt.s32.totalorder %s16_s10, %s16_s10 }
   0x5   :  { %p238_p0 = scmp.ne.s32.totalorder %s16_s10, %s237_s11  ;;  %p243_p2 = scmp.lt.s32.totalorder %s237_s11, %s237_s11 }
   0x7   :  { %p244_p3 = por %p243_p2, %p242_p1 }
   0x9   :  { %p245_p4 = pnand %p244_p3, %p238_p0 }
   0xb   :  { %248 = shalt.err (!%p245_p4)
}
   0xc   :  { %s296_s12 = smov 128   ;;  %s297_s13 = smov 8  }
   0xd   :  { %21 = dma.hbm_to_vmem [thread:$0]  %s365_s0, 256, %s16_s10, [#allocation3], %s296_s12, %s296_s12, %s297_s13  }
   0xe   :  { %s298_s16 = smov [#allocation5]  }
   0xf   :  { %s27_s17 = sshll.u32 %s298_s16, 4  ;;  %s28_s17 = int_to_ptr.vmem [resolvable:$true] %s27_s17 }
  0x10   :  { %s257_s18 = scalar_lea.vmem %s28_s17, 256  ;;  %p262_p6 = scmp.lt.s32.totalorder %s28_s17, %s28_s17 }
  0x11   :  { %p258_p5 = scmp.ne.s32.totalorder %s28_s17, %s257_s18  ;;  %p263_p7 = scmp.lt.s32.totalorder %s257_s18, %s257_s18 }
  0x13   :  { %p264_p8 = por %p263_p7, %p262_p6 }
  0x15   :  { %p265_p9 = pnand %p264_p8, %p258_p5 }
  0x17   :  { %268 = shalt.err (!%p265_p9)
}
  0x18   :  { %33 = dma.hbm_to_vmem [thread:$0]  %s366_s1, 256, %s28_s17, [#allocation6], %s296_s12, %s296_s12, %s297_s13  }
  0x19   :  { %289 = dma.done.wait [#allocation3], 256  }
  0x1a   :  { %290 = vsyncadd [#allocation3], 4294967040 }
  0x1b   :  { %291 = dma.done.wait [#allocation6], 256  }
  0x1c   :  { %292 = vsyncadd [#allocation6], 4294967040  ;;  %v43_v0 = vlaneseq  ;;  %v329_v6 = vld [vmem:[#allocation2] sm:$0xff]  ;;  %v331_v7 = vld [vmem:[#allocation2 + $0x8] sm:$0xff]  ;;  %vm83_vm0 = vcmask 1040384   ;;  %s299_s0 = smov [#allocation7]  }
  0x1d   :  { %v41_v8 = vmul.f32 %v329_v6, %v329_v6  ;;  %v122_v11 = vmul.f32 %v331_v7, %v331_v7  ;;  %s207_s1 = sshll.u32 %s299_s0, 4  ;;  %s208_s1 = int_to_ptr.vmem [resolvable:$true] %s207_s1 }
  0x1e   :  { %v44_v1 = vshrl.u32 %v43_v0, 7  ;;  %s269_s21 = scalar_lea.vmem %s208_s1, 256  ;;  %p274_p11 = scmp.lt.s32.totalorder %s208_s1, %s208_s1 }
  0x1f   :  { %p270_p10 = scmp.ne.s32.totalorder %s208_s1, %s269_s21  ;;  %p275_p12 = scmp.lt.s32.totalorder %s269_s21, %s269_s21 }
  0x20   :  { %v327_v2 = vsub.s32 0, %v44_v1  ;;  %v49_v3 = vsub.s32 1, %v44_v1  ;;  %v53_v4 = vsub.s32 2, %v44_v1  ;;  %v57_v5 = vsub.s32 3, %v44_v1 }
  0x21   :  { %v61_v9 = vsub.s32 4, %v44_v1  ;;  %v65_v10 = vsub.s32 5, %v44_v1  ;;  %v69_v16 = vsub.s32 6, %v44_v1  ;;  %v73_v22 = vsub.s32 7, %v44_v1  ;;  %p276_p13 = por %p275_p12, %p274_p11 }
  0x22   :  { %v46_v12 = vrot.slane %v41_v8, %v327_v2  ;;  %v50_v13 = vrot.slane %v41_v8, %v49_v3  ;;  %v54_v14 = vrot.slane %v41_v8, %v53_v4  ;;  %v58_v15 = vrot.slane %v41_v8, %v57_v5 }
  0x23   :  { %v62_v17 = vrot.slane %v41_v8, %v61_v9  ;;  %v66_v21 = vrot.slane %v41_v8, %v65_v10  ;;  %v127_v25 = vrot.slane %v122_v11, %v327_v2  ;;  %v131_v26 = vrot.slane %v122_v11, %v49_v3  ;;  %p277_p0 = pnand %p276_p13, %p270_p10 }
  0x24   :  { %v84_v18 = vsel %vm83_vm0, %v46_v12, 0.0  ;;  %v85_v19 = vsel %vm83_vm0, %v50_v13, 0.0  ;;  %v87_v20 = vsel %vm83_vm0, %v54_v14, 0.0  ;;  %v89_v24 = vsel %vm83_vm0, %v58_v15, 0.0 }
  0x25   :  { %v86_v23 = vadd.f32 %v85_v19, %v84_v18  ;;  %v135_v27 = vrot.slane %v122_v11, %v53_v4  ;;  %v70_v28 = vrot.slane %v41_v8, %v69_v16  ;;  %v139_v30 = vrot.slane %v122_v11, %v57_v5 }
  0x26   :  { %v91_v31 = vsel %vm83_vm0, %v62_v17, 0.0  ;;  %v143_v32 = vrot.slane %v122_v11, %v61_v9  ;;  %v164_v33 = vsel %vm83_vm0, %v127_v25, 0.0  ;;  %v165_v34 = vsel %vm83_vm0, %v131_v26, 0.0  ;;  %v110_v9 = vld [vmem:[#allocation5] sm:$0xff] }
  0x27   :  { %v88_v29 = vadd.f32 %v87_v20, %v86_v23  ;;  %v166_v36 = vadd.f32 %v165_v34, %v164_v33  ;;  %v167_v37 = vsel %vm83_vm0, %v135_v27, 0.0  ;;  %v74_v38 = vrot.slane %v41_v8, %v73_v22 }
  0x28   :  { %v93_v39 = vsel %vm83_vm0, %v66_v21, 0.0  ;;  %v147_v40 = vrot.slane %v122_v11, %v65_v10  ;;  %v169_v41 = vsel %vm83_vm0, %v139_v30, 0.0  ;;  %v95_v44 = vsel %vm83_vm0, %v70_v28, 0.0 }
  0x29   :  { %v90_v35 = vadd.f32 %v89_v24, %v88_v29  ;;  %v168_v43 = vadd.f32 %v167_v37, %v166_v36  ;;  %v151_v45 = vrot.slane %v122_v11, %v69_v16  ;;  %v171_v46 = vsel %vm83_vm0, %v143_v32, 0.0  ;;  %v191_v16 = vld [vmem:[#allocation5 + $0x8] sm:$0xff] }
  0x2a   :  { %v97_v49 = vsel %vm83_vm0, %v74_v38, 0.0  ;;  %v155_v50 = vrot.slane %v122_v11, %v73_v22  ;;  %v173_v51 = vsel %vm83_vm0, %v147_v40, 0.0 }
  0x2b   :  { %v92_v42 = vadd.f32 %v91_v31, %v90_v35  ;;  %v170_v48 = vadd.f32 %v169_v41, %v168_v43  ;;  %v175_v54 = vsel %vm83_vm0, %v151_v45, 0.0 }
  0x2c   :  { %v177_v57 = vsel %vm83_vm0, %v155_v50, 0.0 }
  0x2d   :  { %v94_v47 = vadd.f32 %v93_v39, %v92_v42  ;;  %v172_v53 = vadd.f32 %v171_v46, %v170_v48 }
  0x2f   :  { %v96_v52 = vadd.f32 %v95_v44, %v94_v47  ;;  %v174_v56 = vadd.f32 %v173_v51, %v172_v53 }
  0x31   :  { %v98_v55 = vadd.f32 %v97_v49, %v96_v52  ;;  %v176_v58 = vadd.f32 %v175_v54, %v174_v56 }
  0x33   :  { %99 = vadd.xlane.f32.xlu0 %v98_v55  ;;  %v178_v59 = vadd.f32 %v177_v57, %v176_v58 }
  0x37   :  { %179 = vadd.xlane.f32.xlu0 %v178_v59 }
  0xbc   :  { %v100_v60 = vpop.xlane.xlu0 %99 }
  0xbd   :  { %v102_v61 = vmul.f32 4.8828124e-06, %v100_v60 }
  0xbf   :  { %225 = vrsqrt.f32 %v102_v61  ;;  %vm105_vm1 = vcmp.eq.f32.partialorder %v102_v61, inf  ;;  %v108_v3 = vand.u32 2147483648, %v102_v61  ;;  %vm107_vm2 = vcmp.eq.f32.partialorder %v102_v61, 0.0 }
  0xc0   :  { %v180_v62 = vpop.xlane.xlu0 %179 }
  0xc1   :  { %v182_v63 = vmul.f32 4.8828124e-06, %v180_v62 }
  0xc3   :  { %227 = vrsqrt.f32 %v182_v63  ;;  %vm185_vm3 = vcmp.eq.f32.partialorder %v182_v63, inf  ;;  %v188_v12 = vand.u32 2147483648, %v182_v63  ;;  %vm187_vm4 = vcmp.eq.f32.partialorder %v182_v63, 0.0 }
  0xcc   :  { %v226_v0 = vpop.eup %225 }
  0xcd   :  { %v104_v1 = vmul.f32 %v226_v0, %v102_v61 }
  0xcf   :  { %v106_v4 = vsel %vm105_vm1, %v102_v61, %v104_v1 }
  0xd0   :  { %v228_v5 = vpop.eup %227  ;;  %v109_v8 = vsel %vm107_vm2, %v108_v3, %v106_v4 }
  0xd1   :  { %v115_v10 = vrot.slane %v109_v8, %v327_v2  ;;  %v184_v11 = vmul.f32 %v228_v5, %v182_v63 }
  0xd3   :  { %v117_v13 = vmul.f32 %v115_v10, %v110_v9  ;;  %v186_v14 = vsel %vm185_vm3, %v182_v63, %v184_v11 }
  0xd4   :  { %v189_v15 = vsel %vm187_vm4, %v188_v12, %v186_v14 }
  0xd5   :  { %v118_v17 = vadd.f32 %v117_v13, %v329_v6  ;;  %v196_v18 = vrot.slane %v189_v15, %v327_v2 }
  0xd7   :  { %119 = vst [vmem:[#allocation7] sm:$0xff] %v118_v17  ;;  %v198_v19 = vmul.f32 %v196_v18, %v191_v16 }
  0xd9   :  { %v199_v20 = vadd.f32 %v198_v19, %v331_v7 }
  0xdb   :  { %201 = vst [vmem:[#allocation7 + $0x8] sm:$0xff] %v199_v20 }
  0xdc   :  { %280 = shalt.err (!%p277_p0)
}
  0xdd   :  { %213 = dma.vmem_to_hbm [thread:$0]  %s208_s1, 256, %s367_s2, [#allocation4], %s296_s12, %s296_s12, %s297_s13  }
  0xde   :  { %293 = dma.done.wait [#allocation4], 256  }
  0xdf   :  { %294 = vsyncadd [#allocation4], 4294967040 }
  0xe0   :  { %217 = vsyncpa [#allocation3], 1 }
  0xe1   :  { %218 = vsyncpa [#allocation6], 1 }
  0xe2   :  { %219 = vsyncpa [#allocation4], 1 }

</bundles_post_ra>
